<compile_context>
chip_gen: v7x
topology: tpu7x:2x2x1
jax: 0.10.0
libtpu: 0.0.40
codegen_flags: <defaults>
</compile_context>

<pallas_src>
import jax
import jax.numpy as jnp
from jax.experimental import pallas as pl
from jax.experimental.pallas import tpu as pltpu

BETA = 0.95        # snn.Leaky(beta=0.95)
THRESHOLD = 1.0    # snntorch default threshold


# ---------------------------------------------------------------------------
# Kernel
# ---------------------------------------------------------------------------
def _bushy_kernel(x_ref, mem_ref, mask_t_ref, spk_ref, mem_out_ref):
    """Fused: cur = x @ mask.T ; Leaky subtract-reset step -> (spk, mem_new)."""
    # (tile, in_f) @ (in_f, tn) on the MXU, f32 accumulation.
    cur = jnp.dot(x_ref[...], mask_t_ref[...], preferred_element_type=jnp.float32)
    mem = mem_ref[...].astype(jnp.float32)
    # TODO(synk): reset ordering matches snntorch defaults (reset_delay=True,
    #             reset_mechanism='subtract'); other snntorch versions differ.
    reset = (mem > THRESHOLD).astype(jnp.float32)
    new_mem = BETA * mem + cur - reset * THRESHOLD
    spk_ref[...] = (new_mem > THRESHOLD).astype(spk_ref.dtype)
    mem_out_ref[...] = new_mem.astype(mem_out_ref.dtype)


# ---------------------------------------------------------------------------
# Tiling helpers
# ---------------------------------------------------------------------------
def _round_up(x, m):
    return ((x + m - 1) // m) * m


def _vmem_budget_bytes():
    """Per-generation VMEM budget: ~70% of physical, clamped to [32, 100] MiB.

    v5e/v6e (128 MiB) -> ~89 MiB; v7x (64 MiB per TC) -> ~45 MiB.
    """
    cap = None
    try:
        cap = int(pltpu.get_tpu_info().vmem_capacity_bytes)
    except Exception:
        cap = None
    if not cap or cap <= 0:
        cap = 64 * 1024 * 1024  # conservative fallback (v7x per-TensorCore)
    return max(32 * 1024 * 1024, min(int(cap * 0.70), 100 * 1024 * 1024))


def _plan_tiles(rows, in_f, out_f, x_bytes, memin_bytes, spk_bytes,
                memout_bytes, vmem_limit):
    """Pick (row_tile, feature_tile) from the VMEM budget.

    Budget = 2 mask buffers (resident, index_map constant) + double-buffered
    x / mem / spk / mem_new row blocks + headroom for compiler scratch.
    """
    # --- feature (N) tile: full out_f if the mask block fits, else a
    #     128-multiple chunk (extra grid axis over out_features). ---
    # TODO(synk): very large in_f would additionally need a K grid axis with an
    #             f32 VMEM accumulator; not implemented here.
    mask_slab_budget = min(vmem_limit // 4, 16 * 1024 * 1024)
    max_tn = (mask_slab_budget // (2 * 4 * in_f)) // 128 * 128
    max_tn = max(128, max_tn)
    tn = out_f if out_f <= max_tn else max_tn

    # --- row (M) tile: fill the remaining budget. ---
    mask_bytes = 2 * 4 * in_f * tn                       # 2 pipeline buffers
    per_row = 2 * (x_bytes * in_f
                   + memin_bytes * tn
                   + spk_bytes * tn
                   + memout_bytes * tn)                  # double-buffered
    headroom = max(4 * 1024 * 1024, vmem_limit // 8)
    usable = max(vmem_limit - mask_bytes - headroom, per_row * 16)
    tile = usable // per_row
    tile = max(8, (tile // 8) * 8)                       # sublane multiple of 8
    tile = min(tile, 8192)                               # diminishing returns
    tile = min(tile, _round_up(rows, 8))

    # v7x megacore: ensure >=2 row-grid steps so both TensorCores get work.
    if rows > 8 and tile >= rows:
        tile = max(8, _round_up(-(-rows // 2), 8))
    return tile, tn


# ---------------------------------------------------------------------------
# One-time weight prep (hoist the transpose out of the per-timestep path)
# ---------------------------------------------------------------------------
def prepare_mask_t(mask):
    """mask (out_features, in_features) -> mask_t (in_features, out_features)."""
    return jnp.asarray(mask, dtype=jnp.float32).T


# ---------------------------------------------------------------------------
# Wrapper
# ---------------------------------------------------------------------------
def bushy_forward(inp, mem, mask_t, *, spk_dtype=None, mem_dtype=None,
                  donate_mem=False):
    """Bushy.forward(inp, mem) -> (spk, mem_new).

    inp:    (..., in_features)              float32
    mem:    (..., out_features)             float32
    mask_t: (in_features, out_features)     float32 (pre-transposed once)
    spk_dtype / mem_dtype: output dtypes (default = input dtypes; int8 spikes
        and/or bf16 mem cut HBM write traffic on this bandwidth-bound kernel).
    donate_mem: alias the mem input buffer to the mem_new output (in-place
        update across timesteps); only use when the old mem is not needed.
    """
    in_f, out_f = mask_t.shape
    lead_shape = inp.shape[:-1]
    spk_dtype = inp.dtype if spk_dtype is None else spk_dtype
    mem_dtype = mem.dtype if mem_dtype is None else mem_dtype

    x2d = inp.reshape(-1, in_f)
    mem2d = mem.reshape(-1, out_f)
    rows = x2d.shape[0]

    vmem_limit = _vmem_budget_bytes()
    tile, tn = _plan_tiles(rows, in_f, out_f,
                           x_bytes=x2d.dtype.itemsize,
                           memin_bytes=mem2d.dtype.itemsize,
                           spk_bytes=jnp.dtype(spk_dtype).itemsize,
                           memout_bytes=jnp.dtype(mem_dtype).itemsize,
                           vmem_limit=vmem_limit)

    grid = (pl.cdiv(rows, tile), pl.cdiv(out_f, tn))

    call_kwargs = {}
    if donate_mem and mem2d.dtype == jnp.dtype(mem_dtype):
        call_kwargs["input_output_aliases"] = {1: 1}   # mem -> mem_new

    spk, mem_new = pl.pallas_call(
        _bushy_kernel,
        out_shape=(
            jax.ShapeDtypeStruct((rows, out_f), spk_dtype),
            jax.ShapeDtypeStruct((rows, out_f), mem_dtype),
        ),
        grid_spec=pltpu.PrefetchScalarGridSpec(
            num_scalar_prefetch=0,
            grid=grid,
            in_specs=[
                pl.BlockSpec((tile, in_f), lambda i, j: (i, 0)),   # x rows
                pl.BlockSpec((tile, tn), lambda i, j: (i, j)),     # mem rows
                pl.BlockSpec((in_f, tn), lambda i, j: (0, j)),     # mask (resident per N tile)
            ],
            out_specs=[
                pl.BlockSpec((tile, tn), lambda i, j: (i, j)),     # spk
                pl.BlockSpec((tile, tn), lambda i, j: (i, j)),     # mem_new
            ],
        ),
        compiler_params=pltpu.CompilerParams(
            dimension_semantics=("parallel", "parallel"),
            vmem_limit_bytes=vmem_limit,
        ),
        **call_kwargs,
    )(x2d, mem2d, mask_t)

    spk = spk.reshape(lead_shape + (out_f,))
    mem_new = mem_new.reshape(lead_shape + (out_f,))
    return spk, mem_new


# ---------------------------------------------------------------------------
# Mask construction (init-time) + plain-JAX reference
# ---------------------------------------------------------------------------
def make_gaussian_mask(in_features, out_features):
    # TODO(synk): the original reset_mask uses gammatone ERB-scale center
    #             frequencies (gt.GammatoneFilterbank) + scipy.stats.norm; here
    #             we build an equivalent deterministic bank of Gaussian
    #             receptive fields (unit peak, like pdf * sqrt(2*pi)*scale).
    x = jnp.arange(in_features, dtype=jnp.float32)
    mean = jnp.linspace(0.0, float(in_features - 1), out_features)
    scale = jnp.linspace(1.0, 4.0, out_features)
    mask = jnp.exp(-0.5 * ((x[None, :] - mean[:, None]) / scale[:, None]) ** 2)
    return mask.astype(jnp.float32)  # (out_features, in_features)


def _ref_forward(inp, mem, mask):
    cur = jnp.dot(inp, mask.T, precision=jax.lax.Precision.HIGHEST)
    reset = (mem > THRESHOLD).astype(mem.dtype)
    new_mem = BETA * mem + cur - reset * THRESHOLD
    spk = (new_mem > THRESHOLD).astype(new_mem.dtype)
    return spk, new_mem


# ---------------------------------------------------------------------------
if __name__ == "__main__":
    # Small, module-consistent shapes: batch=2, seq=8, in=64 -> out=128.
    B, T = 2, 8
    in_features, out_features = 64, 128

    key = jax.random.PRNGKey(0)
    kx, kmem = jax.random.split(key)
    inp = jax.random.normal(kx, (B, T, in_features), dtype=jnp.float32)
    mem0 = jax.random.normal(kmem, (B, T, out_features), dtype=jnp.float32)
    mask = make_gaussian_mask(in_features, out_features)

    mask_t = prepare_mask_t(mask)          # one-time (init) cost
    spk, mem_new = bushy_forward(inp, mem0, mask_t)
    spk = jax.block_until_ready(spk)
    mem_new = jax.block_until_ready(mem_new)

    spk_ref, mem_ref = _ref_forward(inp, mem0, mask)
    assert spk.shape == (B, T, out_features) and mem_new.shape == (B, T, out_features)
    assert jnp.allclose(mem_new, mem_ref, atol=1e-4, rtol=1e-4), "mem mismatch"
    # Spikes are a hard threshold; allow disagreement only exactly at the
    # numerical threshold boundary.
    boundary = jnp.abs(mem_ref - THRESHOLD) < 1e-4
    assert bool(jnp.all((spk == spk_ref) | boundary)), "spk mismatch"

    print("KERNEL_OK")
</pallas_src>

<mosaic_0001>
module attributes {stable_mosaic.version = 11 : i64} {
  func.func @_bushy_kernel(%arg0: i32, %arg1: i32, %arg2: memref<8x64xf32, #tpu.memory_space<vmem>>, %arg3: memref<8x128xf32, #tpu.memory_space<vmem>>, %arg4: memref<64x128xf32, #tpu.memory_space<vmem>>, %arg5: memref<8x128xf32, #tpu.memory_space<vmem>>, %arg6: memref<8x128xf32, #tpu.memory_space<vmem>>) attributes {dimension_semantics = [#tpu.dimension_semantics<parallel>, #tpu.dimension_semantics<parallel>], iteration_bounds = array<i64: 2, 1>, scalar_prefetch = 0 : i64, scratch_operands = 0 : i64, tpu.core_type = #tpu.core_type<tc>, window_params = [{transform_indices = @transform_0, window_bounds = array<i64: 8, 64>}, {transform_indices = @transform_1, window_bounds = array<i64: 8, 128>}, {transform_indices = @transform_2, window_bounds = array<i64: 64, 128>}, {transform_indices = @transform_3, window_bounds = array<i64: 8, 128>}, {transform_indices = @transform_4, window_bounds = array<i64: 8, 128>}]} {
    %c0 = arith.constant 0 : index
    %c0_0 = arith.constant 0 : index
    %0 = vector.load %arg2[%c0, %c0_0] : memref<8x64xf32, #tpu.memory_space<vmem>>, vector<8x64xf32>
    %c0_1 = arith.constant 0 : index
    %c0_2 = arith.constant 0 : index
    %1 = vector.load %arg4[%c0_1, %c0_2] : memref<64x128xf32, #tpu.memory_space<vmem>>, vector<64x128xf32>
    %cst = arith.constant dense<0.000000e+00> : vector<8x128xf32>
    %2 = tpu.matmul %0, %1, %cst {dimension_numbers = #tpu.dot_dimension_numbers<[1], [0], [0], [1], [0, 0, 1, 1], [], []>} : vector<8x64xf32>, vector<64x128xf32>, vector<8x128xf32> -> vector<8x128xf32>
    %c0_3 = arith.constant 0 : index
    %c0_4 = arith.constant 0 : index
    %3 = vector.load %arg3[%c0_3, %c0_4] : memref<8x128xf32, #tpu.memory_space<vmem>>, vector<8x128xf32>
    %cst_5 = arith.constant 1.000000e+00 : f32
    %4 = vector.broadcast %cst_5 : f32 to vector<8x128xf32>
    %5 = arith.cmpf ogt, %3, %4 : vector<8x128xf32>
    %6 = arith.extui %5 : vector<8x128xi1> to vector<8x128xi32>
    %7 = arith.sitofp %6 : vector<8x128xi32> to vector<8x128xf32>
    %cst_6 = arith.constant 0.949999988 : f32
    %8 = vector.broadcast %cst_6 : f32 to vector<8x128xf32>
    %9 = arith.mulf %8, %3 : vector<8x128xf32>
    %10 = arith.addf %9, %2 : vector<8x128xf32>
    %cst_7 = arith.constant 1.000000e+00 : f32
    %11 = vector.broadcast %cst_7 : f32 to vector<8x128xf32>
    %12 = arith.mulf %7, %11 : vector<8x128xf32>
    %13 = arith.subf %10, %12 : vector<8x128xf32>
    %cst_8 = arith.constant 1.000000e+00 : f32
    %14 = vector.broadcast %cst_8 : f32 to vector<8x128xf32>
    %15 = arith.cmpf ogt, %13, %14 : vector<8x128xf32>
    %16 = arith.extui %15 : vector<8x128xi1> to vector<8x128xi32>
    %17 = arith.sitofp %16 : vector<8x128xi32> to vector<8x128xf32>
    %c0_9 = arith.constant 0 : index
    %c0_10 = arith.constant 0 : index
    %18 = vector.load %arg5[%c0_9, %c0_10] : memref<8x128xf32, #tpu.memory_space<vmem>>, vector<8x128xf32>
    tpu.vector_store %arg5[%c0_9, %c0_10], %17 {strides = array<i32>} : memref<8x128xf32, #tpu.memory_space<vmem>>, vector<8x128xf32>,
    %c0_11 = arith.constant 0 : index
    %c0_12 = arith.constant 0 : index
    %19 = vector.load %arg6[%c0_11, %c0_12] : memref<8x128xf32, #tpu.memory_space<vmem>>, vector<8x128xf32>
    tpu.vector_store %arg6[%c0_11, %c0_12], %13 {strides = array<i32>} : memref<8x128xf32, #tpu.memory_space<vmem>>, vector<8x128xf32>,
    return
  }
  func.func @transform_0(%arg0: i32, %arg1: i32) -> (i32, i32) {
    %c0_i32 = arith.constant 0 : i32
    %c0_i32_0 = arith.constant 0 : i32
    return %arg0, %c0_i32 : i32, i32
  }
  func.func @transform_1(%arg0: i32, %arg1: i32) -> (i32, i32) {
    %c0_i32 = arith.constant 0 : i32
    return %arg0, %arg1 : i32, i32
  }
  func.func @transform_2(%arg0: i32, %arg1: i32) -> (i32, i32) {
    %c0_i32 = arith.constant 0 : i32
    %c0_i32_0 = arith.constant 0 : i32
    return %c0_i32, %arg1 : i32, i32
  }
  func.func @transform_3(%arg0: i32, %arg1: i32) -> (i32, i32) {
    %c0_i32 = arith.constant 0 : i32
    return %arg0, %arg1 : i32, i32
  }
  func.func @transform_4(%arg0: i32, %arg1: i32) -> (i32, i32) {
    %c0_i32 = arith.constant 0 : i32
    return %arg0, %arg1 : i32, i32
  }
}

</mosaic_0001>

<bundles_post_ra>
// kernel: tpu_custom_call.1
= control target key start
LH: loop header
LB: loop body
LE: loop exit
PB: predicated region body
PF: predicated region fallthrough
CT: control target
= control target key end

     0   :  { %s1265_s0 = inlined_call_operand.hbm [shape: f32[16,64], index: 0, kind: input, shape index: {}]   ;;  %s1266_s1 = inlined_call_operand.hbm [shape: f32[16,128], index: 1, kind: input, shape index: {}]   ;;  %s1267_s2 = inlined_call_operand.hbm [shape: f32[64,128], index: 2, kind: input, shape index: {}]   ;;  %s1268_s3 = inlined_call_operand.hbm [shape: f32[16,128], index: 3, kind: output, shape index: {0}]   ;;  %s1269_s4 = inlined_call_operand.hbm [shape: f32[16,128], index: 4, kind: output, shape index: {1}]  }
   0x1   :  { %1276 = sst [smem:[#allocation18_spill]] %s1267_s2 }
   0x2   :  { %10 = vsyncpa [#allocation3], 0 }
   0x3   :  { %12 = vsyncpa [#allocation3 + $0x1], 0 }
   0x4   :  { %13 = vsyncpa [#allocation6], 0 }
   0x5   :  { %15 = vsyncpa [#allocation6 + $0x1], 0 }
   0x6   :  { %16 = vsyncpa [#allocation4], 0 }
   0x7   :  { %18 = vsyncpa [#allocation4 + $0x1], 0 }
   0x8   :  { %19 = vsyncpa [#allocation10], 0 }
   0x9   :  { %21 = vsyncpa [#allocation10 + $0x1], 0  ;;  %s976_s15 = smov 0   ;;  %s978_s16 = smov 0  }
   0xa   :  { %s980_s17 = smov 0   ;;  %s982_s18 = smov 0  }
   0xb   :  { %s984_s19 = smov 0   ;;  %s986_s20 = smov 0  }
   0xc LB: > { %1277 = sst [smem:[#allocation16_spill]] %s935_s19  ;;  %s1007_s21 = sadd.s32 4294967295, %s939_s20   ;;  %s939_s20 = sphi %s986_s20, %s27_s20   ;;  %s935_s19 = sphi %s984_s19, %s1296_s19   ;;  %s931_s18 = sphi %s982_s18, %s1295_s18   ;;  %s927_s17 = sphi %s980_s17, %s1299_s17   ;;  %s923_s16 = sphi %s978_s16, %s1298_s16   ;;  %s919_s15 = sphi %s976_s15, %s1297_s15  }
   0xd   : > { %s578_s22 = sadd.s32 4294967294, %s939_s20   ;;  %p59_p0 = scmp.ne.s32.totalorder %s923_s16, %s919_s15 }
   0xe   : > { %p1270_p1 = scmp.eq.s32.totalorder %s1007_s21, 0  ;;  %p145_p3 = scmp.eq.s32.totalorder %s578_s22, 1 }
   0xf   : > { %p579_p5 = scmp.ge.s32.totalorder %s939_s20, 1  ;;  %p180_p7 = scmp.lt.s32.totalorder %s939_s20, 3 }
  0x10   : > { %p1016_p4 = por %p1270_p1, %p59_p0  ;;  %p1021_p6 = por %p145_p3, %p59_p0 }
  0x11   : > { %p1026_p8 = pnand %p579_p5, %p180_p7  ;;  %s941_s26 = smov [#allocation7]  }
  0x12   : > { %s1278_s23 = scalar_select %p1016_p4, 1, 0 }
  0x13   : > { %s1279_s24 = scalar_select %p1021_p6, 1, 0 }
  0x14   : > { %s1280_s25 = scalar_select %p1026_p8, 1, 0 }
  0x15   : > { %s194_s27 = sshll.u32 %s941_s26, 4  ;;  %p653_p9 = pneg %p1026_p8  ;;  %s195_s27 = int_to_ptr.vmem [resolvable:$true] %s194_s27 }
  0x16   : > { %s39_s29 = sadd.s32 1, %s935_s19  ;;  %s1282_s2 = sld [smem:[#allocation18_spill]] }
  0x17   : > { %p1035_p11 = pnand %p653_p9, %p1270_p1 }
  0x19   : > { %p731_p13 = pneg %p1035_p11 }
  0x1c   : > { %s729_s6 = scalar_lea.hbm %s1282_s2, 1024 }
  0x1d   : > { %p730_p12 = scmp.ne.s32.totalorder %s1282_s2, %s729_s6  ;;  %p736_p5 = scmp.lt.u32.totalorder %s729_s6, %s1282_s2 }
  0x1f   : > { %p732_p0 = pnand %p731_p13, %p730_p12 }
  0x21   : > { %p733_p3 = pneg %p732_p0 }
  0x23   : > { %p738_p7 = pnand %p736_p5, %p733_p3 }
  0x25   : > { %741 = shalt.err (!%p738_p7)
}
  0x26   : > { %s742_s11 = scalar_lea.vmem %s195_s27, 1024  ;;  %p750_p2 = scmp.lt.s32.totalorder %s195_s27, %s195_s27 }
  0x27   : > { %p743_p9 = scmp.ne.s32.totalorder %s195_s27, %s742_s11  ;;  %p751_p6 = scmp.lt.s32.totalorder %s742_s11, %s742_s11 }
  0x29   : > { %p745_p10 = pnand %p743_p9, %p731_p13  ;;  %p752_p4 = por %p751_p6, %p750_p2 }
  0x2b   : > { %p746_p1 = pneg %p745_p10 }
  0x2d   : > { %p753_p8 = pnand %p752_p4, %p746_p1 }
  0x2f   : > { %756 = shalt.err (!%p753_p8)
}
  0x30   : > { %s942_s12 = smov 128   ;;  %s943_s13 = smov 8  }
  0x31   : > { %656 = dma.hbm_to_vmem [thread:$0]  (!%p1035_p11), %s1282_s2, 1024, %s195_s27, [#allocation6], %s942_s12, %s942_s12, %s943_s13  }
  0x32   : > { %p41_p1 = scmp.ge.s32.totalorder %s39_s29, 2  ;;  %s46_s26 = sadd.s32 1, %s927_s17 }
  0x33   : > { %p53_p2 = scmp.ne.s32.totalorder %s927_s17, %s923_s16  ;;  %p54_p4 = scmp.eq.s32.totalorder %s939_s20, 0 }
  0x34   : > { %s1301_s29 = smov (%p41_p1, %s39_s29), 0  ;;  %p1285_p8 = scmp.eq.s32.totalorder %s1007_s21, 1 }
  0x35   : > { %1283 = sst [smem:[#allocation17_spill]] %s1301_s29  ;;  %p1062_p6 = por %p54_p4, %p53_p2 }
  0x36   : > { %p1068_p10 = por %p1285_p8, %p53_p2  ;;  %s43_s5 = ssub.s32 %s935_s19, %s1301_s29 }
  0x37   : > { %p672_p11 = scmp.lt.s32.totalorder %s939_s20, 2  ;;  %p44_p12 = scmp.eq.s32.totalorder %s43_s5, 0 }
  0x38   : > { %s1286_s28 = scalar_select %p1068_p10, 1, 0 }
  0x39   : > { %s208_s27 = sand.u32 1, %s927_s17   ;;  %s583_s8 = sshll.u32 %s935_s19, 7 }
  0x3a   : > { %s1076_s6 = sshll.u32 %s208_s27, 3  ;;  %s1085_s11 = scalar_lea.hbm %s1265_s0, %s583_s8 }
  0x3b   : > { %s1079_s7 = scalar_select %p44_p12, %s927_s17, %s46_s26  }
  0x3c   : > { %s212_s12 = scalar_lea.vmem [#allocation2], %s1076_s6  ;;  %p1092_p13 = pnand %p672_p11, %p1062_p6 }
  0x3d   : > { %s219_s13 = sshll.u32 %s212_s12, 4  ;;  %s1099_s5 = scalar_lea.hbm %s1266_s1, %s583_s8  ;;  %s1088_s13 = int_to_ptr.vmem [resolvable:$true] %s219_s13 }
  0x3e   : > { %s226_s9 = sand.u32 1, %s939_s20   ;;  %s209_s10 = scalar_lea.sflag [#allocation3], %s208_s27 }
  0x3f   : > { %s757_s2 = scalar_lea.hbm %s1085_s11, 128  ;;  %p759_p3 = pneg %p1092_p13 }
  0x40   : > { %p758_p0 = scmp.ne.s32.totalorder %s1085_s11, %s757_s2  ;;  %s762_s29 = scalar_lea.hbm %s1265_s0, 256 }
  0x41   : > { %p763_p9 = scmp.lt.u32.totalorder %s1085_s11, %s1265_s0  ;;  %p764_p1 = scmp.lt.u32.totalorder %s762_s29, %s757_s2 }
  0x42   : > { %p760_p5 = pnand %p759_p3, %p758_p0  ;;  %p766_p4 = scmp.lt.u32.totalorder %s757_s2, %s1085_s11 }
  0x43   : > { %p765_p2 = por %p764_p1, %p763_p9 }
  0x44   : > { %p761_p7 = pneg %p760_p5 }
  0x45   : > { %p767_p6 = por %p766_p4, %p765_p2 }
  0x47   : > { %p768_p8 = pnand %p767_p6, %p761_p7 }
  0x49   : > { %771 = shalt.err (!%p768_p8)
}
  0x4a   : > { %s772_s27 = scalar_lea.vmem %s1088_s13, 128  ;;  %s944_s8 = smov [#allocation2]  }
  0x4b   : > { %p773_p11 = scmp.ne.s32.totalorder %s1088_s13, %s772_s27  ;;  %s777_s26 = sshll.u32 %s944_s8, 4  ;;  %s778_s26 = int_to_ptr.vmem [resolvable:$false] %s777_s26 }
  0x4c   : > { %s779_s19 = scalar_lea.vmem %s778_s26, 256  ;;  %p780_p5 = scmp.lt.s32.totalorder %s1088_s13, %s778_s26 }
  0x4d   : > { %p775_p12 = pnand %p773_p11, %p759_p3  ;;  %p781_p9 = scmp.lt.s32.totalorder %s779_s19, %s772_s27 }
  0x4f   : > { %p776_p0 = pneg %p775_p12  ;;  %p782_p1 = por %p781_p9, %p780_p5 }
  0x51   : > { %p783_p2 = pnand %p782_p1, %p776_p0 }
  0x53   : > { %786 = shalt.err (!%p783_p2)
}
  0x54   : > { %660 = dma.hbm_to_vmem [thread:$0]  (!%p1092_p13), %s1085_s11, 128, %s1088_s13, %s209_s10  }
  0x55   : > { %s230_s2 = scalar_lea.vmem [#allocation5], %s1076_s6  ;;  %s227_s30 = scalar_lea.sflag [#allocation6], %s226_s9 }
  0x56   : > { %s238_s29 = sshll.u32 %s230_s2, 4  ;;  %s787_s12 = scalar_lea.hbm %s1099_s5, 128  ;;  %s239_s29 = int_to_ptr.vmem [resolvable:$true] %s238_s29 }
  0x57   : > { %p788_p7 = scmp.ne.s32.totalorder %s1099_s5, %s787_s12  ;;  %s792_s8 = scalar_lea.hbm %s1266_s1, 256 }
  0x58   : > { %p793_p8 = scmp.lt.u32.totalorder %s1099_s5, %s1266_s1  ;;  %p794_p11 = scmp.lt.u32.totalorder %s792_s8, %s787_s12 }
  0x59   : > { %p790_p4 = pnand %p788_p7, %p759_p3  ;;  %p796_p0 = scmp.lt.u32.totalorder %s787_s12, %s1099_s5 }
  0x5a   : > { %p795_p12 = por %p794_p11, %p793_p8 }
  0x5b   : > { %p791_p6 = pneg %p790_p4 }
  0x5c   : > { %p797_p5 = por %p796_p0, %p795_p12 }
  0x5e   : > { %p798_p9 = pnand %p797_p5, %p791_p6 }
  0x60   : > { %801 = shalt.err (!%p798_p9)
}
  0x61   : > { %s802_s6 = scalar_lea.vmem %s239_s29, 128  ;;  %s945_s11 = smov [#allocation5]  }
  0x62   : > { %p803_p1 = scmp.ne.s32.totalorder %s239_s29, %s802_s6  ;;  %s807_s13 = sshll.u32 %s945_s11, 4  ;;  %s808_s13 = int_to_ptr.vmem [resolvable:$false] %s807_s13 }
  0x63   : > { %s809_s9 = scalar_lea.vmem %s808_s13, 256  ;;  %p810_p4 = scmp.lt.s32.totalorder %s239_s29, %s808_s13 }
  0x64   : > { %p805_p2 = pnand %p803_p1, %p759_p3  ;;  %p811_p10 = scmp.lt.s32.totalorder %s809_s9, %s802_s6 }
  0x66   : > { %p806_p7 = pneg %p805_p2  ;;  %p812_p8 = por %p811_p10, %p810_p4 }
  0x68   : > { %p813_p11 = pnand %p812_p8, %p806_p7 }
  0x6a   : > { %816 = shalt.err (!%p813_p11)
}
  0x6b   : > { %663 = dma.hbm_to_vmem [thread:$0]  (!%p1092_p13), %s1099_s5, 128, %s239_s29, %s227_s30  }
  0x6c   : > { %p1288_p6 = scmp.ne.s32.totalorder %s1280_s25, 0 }
  0x6d   : > { %s1152_s10 = sand.u32 (!%p1288_p6), 1, %s923_s16   ;;  %p1289_p10 = scmp.ne.s32.totalorder (!%p1288_p6), %s1278_s23, 0 }
  0x6e   : > { %247 = sbr.rel (%p1288_p6) target bundleno = 396 (0x18c), region = 32  ;;  %s1155_s2 = sshll.u32 (!%p1288_p6), %s1152_s10, 3 }
  0x6f   : > { %s250_s12 = scalar_lea.sflag (!%p1288_p6), [#allocation3], %s1152_s10  ;;  %s253_s22 = scalar_lea.vmem (!%p1288_p6), [#allocation2], %s1155_s2 }
  0x75   : > { %898 = dma.done.wait (%p1289_p10), %s250_s12, 128  }
  0x76   : > { %900 = vsyncadd (%p1289_p10), %s250_s12, 4294967168  ;;  %s258_s25 = sand.u32 1, %s1007_s21   ;;  %s262_s5 = scalar_lea.vmem [#allocation5], %s1155_s2 }
  0x77   : > { %s259_s14 = scalar_lea.sflag [#allocation6], %s258_s25 }
  0x78   : > { %902 = dma.done.wait (%p1289_p10), %s259_s14, 128  }
  0x79   : > { %904 = vsyncadd (%p1289_p10), %s259_s14, 4294967168  ;;  %p1290_p13 = scmp.eq.s32.totalorder %s1007_s21, 0 }
  0x7b   : > { %906 = dma.done.wait (%p1290_p13), [#allocation6], 1024   ;;  %p1291_p3 = pmov %p1290_p13 }
  0x7c   : > { %v946_v0 = vmov 0.0|0.0   ;;  %vm947_vm0 = vmmov 0   ;;  %v948_v1 = vmov 0.0   ;;  %v302_v2 = vld [vmem:[#allocation7] sm:$0xff]  ;;  %v303_v3 = vld [vmem:[#allocation7 + $0x8] sm:$0xff]  ;;  %v304_v4 = vld [vmem:[#allocation7 + $0x10] sm:$0xff] }
  0x7d   : > { %908 = vsyncadd (%p1291_p3), [#allocation6], 4294966272  ;;  %629 = vmatprep.subr.bf16.mxu0 %v946_v0  ;;  %626 = vmatprep.mubr.msk.f32.mxu0 %vm947_vm0, %v948_v1  ;;  %v630_v5 = vpack.c.bf16 %v303_v3, %v302_v2  ;;  %v305_v6 = vld [vmem:[#allocation7 + $0x18] sm:$0xff]  ;;  %v306_v8 = vld [vmem:[#allocation7 + $0x20] sm:$0xff]  ;;  %vm310_vm1 = vcmask 523264   ;;  %s597_s21 = sshll.u32 %s931_s18, 7 }
  0x7e   : > { %v633_v7 = vpack.c.bf16 %v305_v6, %v304_v4  ;;  %v307_v9 = vld [vmem:[#allocation7 + $0x28] sm:$0xff]  ;;  %v308_v11 = vld [vmem:[#allocation7 + $0x30] sm:$0xff]  ;;  %v309_v12 = vld [vmem:[#allocation7 + $0x38] sm:$0xff]  ;;  %s300_s23 = scalar_lea.vmem [#allocation9], %s1155_s2  ;;  %s293_s30 = scalar_lea.vmem [#allocation8], %s1155_s2 }
  0x7f   : > { %631 = vmatpush3.bf16.msra.mxu0 %v630_v5  ;;  %v636_v10 = vpack.c.bf16 %v307_v9, %v306_v8  ;;  %v639_v13 = vpack.c.bf16 %v309_v12, %v308_v11  ;;  %v301_v14 = vld [vmem:[%s253_s22] sm:$0xff]  ;;  %v384_v15 = vld [vmem:[%s262_s5] sm:$0xff]  ;;  %s430_s29 = sshll.u32 %s300_s23, 4  ;;  %s416_s27 = sshll.u32 %s293_s30, 4  ;;  %s1187_s29 = int_to_ptr.vmem [resolvable:$true] %s430_s29  ;;  %s1194_s27 = int_to_ptr.vmem [resolvable:$true] %s416_s27 }
  0x80   : > { %632 = vmatprep.subr.bf16.mxu0 %v946_v0  ;;  %vm385_vm2 = vcmp.gt.f32.partialorder %v384_v15, 1.0  ;;  %v388_v16 = vmul.f32 0.95, %v384_v15  ;;  %s1185_s19 = scalar_lea.hbm %s1269_s4, %s597_s21  ;;  %s1192_s11 = scalar_lea.hbm %s1268_s3, %s597_s21 }
  0x81   : > { %v593_v18 = vsel %vm385_vm2, 1.0, %v948_v1  ;;  %s402_s13 = scalar_lea.sflag [#allocation10], %s1152_s10  ;;  %s817_s9 = scalar_lea.vmem %s1187_s29, 128 }
  0x82   : > { %p818_p12 = scmp.ne.s32.totalorder %s1187_s29, %s817_s9  ;;  %p1292_p0 = scmp.ne.s32.totalorder %s1286_s28, 0 }
  0x83   : > { %634 = vmatpush3.bf16.msra.mxu0 %v633_v7  ;;  %s949_s12 = smov [#allocation9]  }
  0x84   : > { %635 = vmatprep.subr.bf16.mxu0 %v946_v0  ;;  %p819_p5 = pnand %p818_p12, %p1292_p0  ;;  %s821_s22 = sshll.u32 %s949_s12, 4  ;;  %s822_s22 = int_to_ptr.vmem [resolvable:$false] %s821_s22 }
  0x85   : > { %s823_s25 = scalar_lea.vmem %s822_s22, 256  ;;  %p824_p1 = scmp.lt.s32.totalorder %s1187_s29, %s822_s22 }
  0x86   : > { %p820_p9 = pneg %p819_p5  ;;  %p825_p2 = scmp.lt.s32.totalorder %s823_s25, %s817_s9 }
  0x87   : > { %637 = vmatpush3.bf16.msra.mxu0 %v636_v10 }
  0x88   : > { %638 = vmatprep.subr.bf16.mxu0 %v946_v0  ;;  %p826_p7 = por %p825_p2, %p824_p1 }
  0x8a   : > { %p827_p4 = pnand %p826_p7, %p820_p9 }
  0x8b   : > { %640 = vmatpush3.bf16.msra.mxu0 %v639_v13 }
  0x8e   : > { %627 = vmatmul.mubr.msk.f32.vlgmr.msra.gmra.mrb[0].mxu0 %vm310_vm1, %v301_v14 }
 0x161   : > { %v380_v17 = vpop.f32.mrb[0].mxu0 }
 0x162   : > { %v389_v19 = vadd.f32 %v388_v16, %v380_v17  ;;  %v628_v20 = vpop.f32.mrb[1].mxu0 }
 0x164   : > { %v390_v21 = vsub.f32 %v389_v19, %v593_v18 }
 0x166   : > { %vm391_vm3 = vcmp.gt.f32.partialorder %v390_v21, 1.0  ;;  %395 = vst [vmem:[%s300_s23] sm:$0xff] %v390_v21 }
 0x167   : > { %v594_v22 = vsel %vm391_vm3, 1.0, %v948_v1 }
 0x168   : > { %830 = shalt.err (!%p827_p4)
}
 0x169   : > { %s831_s14 = scalar_lea.hbm %s1185_s19, 128  ;;  %s835_s23 = scalar_lea.hbm %s1269_s4, 256 }
 0x16a   : > { %p832_p8 = scmp.ne.s32.totalorder %s1185_s19, %s831_s14  ;;  %p836_p10 = scmp.lt.u32.totalorder %s1185_s19, %s1269_s4 }
 0x16b   : > { %p837_p13 = scmp.lt.u32.totalorder %s835_s23, %s831_s14  ;;  %p839_p12 = scmp.lt.u32.totalorder %s831_s14, %s1185_s19 }
 0x16c   : > { %p833_p11 = pnand %p832_p8, %p1292_p0 }
 0x16d   : > { %p838_p3 = por %p837_p13, %p836_p10 }
 0x16e   : > { %p834_p6 = pneg %p833_p11 }
 0x16f   : > { %p840_p5 = por %p839_p12, %p838_p3 }
 0x171   : > { %p841_p9 = pnand %p840_p5, %p834_p6 }
 0x173   : > { %844 = shalt.err (!%p841_p9)
}
 0x174   : > { %650 = dma.vmem_to_hbm [thread:$0]  (%p1292_p0), %s1187_s29, 128, %s1185_s19, %s402_s13   ;;  %394 = vst [vmem:[%s293_s30] sm:$0xff] %v594_v22 }
 0x175   : > { %s397_s18 = scalar_lea.sflag [#allocation4], %s1152_s10  ;;  %s845_s6 = scalar_lea.vmem %s1194_s27, 128 }
 0x176   : > { %p846_p1 = scmp.ne.s32.totalorder %s1194_s27, %s845_s6  ;;  %s950_s9 = smov [#allocation8]  }
 0x177   : > { %s849_s12 = sshll.u32 %s950_s9, 4  ;;  %s850_s12 = int_to_ptr.vmem [resolvable:$false] %s849_s12 }
 0x178   : > { %p847_p2 = pnand %p846_p1, %p1292_p0  ;;  %s851_s22 = scalar_lea.vmem %s850_s12, 256 }
 0x179   : > { %p852_p4 = scmp.lt.s32.totalorder %s1194_s27, %s850_s12  ;;  %p853_p8 = scmp.lt.s32.totalorder %s851_s22, %s845_s6 }
 0x17a   : > { %p848_p7 = pneg %p847_p2 }
 0x17b   : > { %p854_p11 = por %p853_p8, %p852_p4 }
 0x17d   : > { %p855_p6 = pnand %p854_p11, %p848_p7 }
 0x17f   : > { %858 = shalt.err (!%p855_p6)
}
 0x180   : > { %s859_s10 = scalar_lea.hbm %s1192_s11, 128  ;;  %s863_s30 = scalar_lea.hbm %s1268_s3, 256 }
 0x181   : > { %p860_p10 = scmp.ne.s32.totalorder %s1192_s11, %s859_s10  ;;  %p864_p12 = scmp.lt.u32.totalorder %s1192_s11, %s1268_s3 }
 0x182   : > { %p865_p5 = scmp.lt.u32.totalorder %s863_s30, %s859_s10  ;;  %p867_p1 = scmp.lt.u32.totalorder %s859_s10, %s1192_s11 }
 0x183   : > { %p861_p13 = pnand %p860_p10, %p1292_p0 }
 0x184   : > { %p866_p9 = por %p865_p5, %p864_p12 }
 0x185   : > { %p862_p3 = pneg %p861_p13 }
 0x186   : > { %p868_p2 = por %p867_p1, %p866_p9 }
 0x188   : > { %p869_p7 = pnand %p868_p2, %p862_p3 }
 0x18a   : > { %872 = shalt.err (!%p869_p7)
}
 0x18b   : > { %649 = dma.vmem_to_hbm [thread:$0]  (%p1292_p0), %s1194_s27, 128, %s1192_s11, %s397_s18  }
 0x18c PF: > { %s442_s25 = sand.u32 1, %s919_s15   ;;  %p1293_p4 = scmp.ne.s32.totalorder %s1279_s24, 0 }
 0x18d   : > { %p1294_p8 = scmp.ge.s32.totalorder %s939_s20, 2  ;;  %s443_s14 = scalar_lea.sflag [#allocation4], %s442_s25 }
 0x18f   : > { %p665_p11 = pnand %p1294_p8, %p1293_p4 }
 0x191   : > { %910 = dma.done.wait (!%p665_p11), %s443_s14, 128  }
 0x192   : > { %912 = vsyncadd (!%p665_p11), %s443_s14, 4294967168  ;;  %s452_s5 = scalar_lea.sflag [#allocation10], %s442_s25 }
 0x193   : > { %914 = dma.done.wait (!%p665_p11), %s452_s5, 128  }
 0x194   : > { %916 = vsyncadd (!%p665_p11), %s452_s5, 4294967168  ;;  %s27_s20 = sadd.s32 1, %s939_s20   ;;  %s1295_s18 = sld [smem:[#allocation16_spill]] }
 0x195   : > { %p24_p6 = scmp.ge.s32.totalorder %s27_s20, 4   ;;  %s1296_s19 = sld [smem:[#allocation17_spill]] }
 0x196   : > { %s1297_s15 = smov %s923_s16  ;;  %s1298_s16 = smov %s927_s17 }
 0x197   : > { %s1299_s17 = smov %s1079_s7  ;;  %26 = sbr.rel (!%p24_p6) target bundleno = 12 (0xc), region = 112 }
 0x19e   :  { %457 = vsyncpa [#allocation3], 1 }
 0x19f   :  { %459 = vsyncpa [#allocation3 + $0x1], 1 }
 0x1a0   :  { %460 = vsyncpa [#allocation6], 1 }
 0x1a1   :  { %462 = vsyncpa [#allocation6 + $0x1], 1 }
 0x1a2   :  { %463 = vsyncpa [#allocation4], 1 }
 0x1a3   :  { %465 = vsyncpa [#allocation4 + $0x1], 1 }
 0x1a4   :  { %466 = vsyncpa [#allocation10], 1 }
 0x1a5   :  { %468 = vsyncpa [#allocation10 + $0x1], 1 }

</bundles_post_ra>
